<compile_context>
chip_gen: v5e
topology: v5e:2x2
jax: 0.10.0
libtpu: 0.0.40
codegen_flags: <defaults>
</compile_context>

<pallas_src>
import math

import jax
import jax.numpy as jnp
from jax import lax
from jax.experimental import pallas as pl
from jax.experimental.pallas import tpu as pltpu


def _onehot_gather_kernel(src_ref, x_ref, o_ref):
    """Gather one batch-group's rows via a block-diagonal one-hot matmul.

    src_ref: (M, 1) int32             — flat source row (within this group's
                                        T*g slab) for each of M = remain_T*g
                                        output rows.
    x_ref  : (T, g, C) or (T*g, C)    — this group's patch block (C = lanes).
    o_ref  : (remain_T, g, C) or (M, C) — gathered output block.
    """
    C = x_ref.shape[-1]
    K = math.prod(x_ref.shape[:-1])                 # T * g source rows

    # Free (layout-preserving) flatten: g is a multiple of 8 or the full batch.
    x_flat = x_ref[...].reshape(K, C)

    # One lane-row iota broadcast against the (M, 1) indexes: per-step one-hot
    # cost is ~compare + cast only (no full (M, K) iota materialized).
    col = lax.broadcasted_iota(jnp.int32, (1, K), 1)
    onehot = (col == src_ref[...]).astype(x_flat.dtype)        # exact 0/1 rows

    # HIGHEST keeps f32 gathers exact (multi-pass MXU); bf16 is native anyway.
    precision = lax.Precision.HIGHEST if x_flat.dtype == jnp.float32 else None
    gathered = jnp.dot(onehot, x_flat,
                       preferred_element_type=jnp.float32,
                       precision=precision)
    o_ref[...] = gathered.astype(o_ref.dtype).reshape(o_ref.shape)


def _pick_group_size(T, B, remain_T, target_rows=256):
    """Batches per grid step: a multiple of 8 dividing B (else the full batch),
    grown so remain_T*g approaches `target_rows` while keeping >=2 grid steps
    (v7x dual TensorCore) and a small one-hot."""
    if B % 8 != 0:
        return B                                    # single full-extent group
    g = 8
    while (B % (2 * g) == 0
           and B // (2 * g) >= 2                    # keep >=2 parallel steps
           and remain_T * g < target_rows           # grow M toward MXU-friendly size
           and (remain_T * 2 * g) * (T * 2 * g) * 4 <= (4 << 20)):
        g *= 2
    return g


def patch_shuffle(patches, forward_indexes, ratio):
    """patches: (T, B, C); forward_indexes: (T, B) int; returns (remain_T, B, C)."""
    T, B, C = patches.shape
    remain_T = int(T * (1 - ratio))
    if remain_T <= 0:                               # ratio == 1.0 -> empty output
        return jnp.zeros((0, B, C), patches.dtype)

    g = _pick_group_size(T, B, remain_T)
    num_groups = B // g
    M = remain_T * g                                # output rows per grid step
    K = T * g                                       # source rows per grid step
    itemsize = jnp.dtype(patches.dtype).itemsize

    # Flat source row within the group slab for output row m = r*g + j of
    # group i:  fwd[r, i*g + j] * g + j.  Laid out group-major so grid step i
    # reads rows [i*M, (i+1)*M) of the (num_groups*M, 1) index array.
    fwd = forward_indexes[:remain_T].astype(jnp.int32)            # (remain_T, B)
    local_b = (jnp.arange(B, dtype=jnp.int32) % g)[None, :]       # (1, B)
    src = (fwd * g + local_b)                                     # (remain_T, B)
    src = (src.reshape(remain_T, num_groups, g)
              .transpose(1, 0, 2)
              .reshape(num_groups * M, 1))

    # Always set the scoped VMEM limit (v5e default is only 16 MiB) and cap it
    # to the chip's per-core capacity minus headroom (~56 MiB on v7x).
    vmem_est = (2 * K * C * itemsize                # x block, double-buffered
                + 2 * M * C * itemsize              # out block, double-buffered
                + 2 * M * 128 * 4                   # src block (lane-padded)
                + 3 * M * K * 4                     # one-hot + compare temporaries
                + (2 << 20))                        # headroom
    try:
        vmem_cap = int(pltpu.get_tpu_info().vmem_capacity_bytes)
    except Exception:
        vmem_cap = 64 << 20                         # conservative (v7x per-TC)
    vmem_limit = int(min(max(vmem_est, 16 << 20), vmem_cap - (8 << 20)))

    cparams = pltpu.CompilerParams(dimension_semantics=("parallel",),
                                   vmem_limit_bytes=vmem_limit)

    if num_groups == 1:
        # Whole batch in one step: free row-major 2-D views + full-extent
        # blocks (legal even when B is not a multiple of 8).
        out_flat = pl.pallas_call(
            _onehot_gather_kernel,
            out_shape=jax.ShapeDtypeStruct((M, C), patches.dtype),
            grid=(1,),
            in_specs=[pl.BlockSpec((M, 1), lambda i: (i, 0)),
                      pl.BlockSpec((K, C), lambda i: (0, 0))],
            out_specs=pl.BlockSpec((M, C), lambda i: (i, 0)),
            compiler_params=cparams,
        )(src, patches.reshape(T * B, C))
        return out_flat.reshape(remain_T, B, C)     # free row-major view

    out = pl.pallas_call(
        _onehot_gather_kernel,
        out_shape=jax.ShapeDtypeStruct((remain_T, B, C), patches.dtype),
        grid=(num_groups,),
        in_specs=[pl.BlockSpec((M, 1), lambda i: (i, 0)),          # group src rows
                  pl.BlockSpec((T, g, C), lambda i: (0, i, 0))],   # group patch block
        out_specs=pl.BlockSpec((remain_T, g, C), lambda i: (0, i, 0)),
        compiler_params=cparams,
    )(src, patches)
    return out


def make_shuffle_indexes(key, T, B):
    """Per-batch random permutation (analogue of np random_indexes per batch)."""
    keys = jax.random.split(key, B)
    forward = jax.vmap(lambda k: jax.random.permutation(k, T))(keys)   # (B, T)
    forward = forward.T.astype(jnp.int32)                              # (T, B)
    backward = jnp.argsort(forward, axis=0).astype(jnp.int32)          # (T, B)
    return forward, backward


class PatchShuffle:
    def __init__(self, ratio):
        self.ratio = ratio

    def __call__(self, patches, key):
        T, B, _ = patches.shape
        fwd, bwd = make_shuffle_indexes(key, T, B)
        out = patch_shuffle(patches, fwd, self.ratio)
        return out, fwd, bwd


if __name__ == "__main__":
    root_key = jax.random.PRNGKey(0)

    def run_case(T, B, C, ratio, key):
        k_data, k_perm = jax.random.split(key)
        patches = jax.random.normal(k_data, (T, B, C), dtype=jnp.float32)
        module = PatchShuffle(ratio)
        out, fwd, bwd = module(patches, k_perm)
        out = jax.block_until_ready(out)

        remain_T = int(T * (1 - ratio))
        # Reference: same semantics as torch.gather(dim=0) then [:remain_T].
        ref = jnp.take_along_axis(
            patches, jnp.broadcast_to(fwd[:, :, None], (T, B, C)), axis=0
        )[:remain_T]

        assert out.shape == (remain_T, B, C)
        assert fwd.shape == (T, B) and bwd.shape == (T, B)
        # backward_indexes must invert forward_indexes per batch.
        assert jnp.all(jnp.take_along_axis(fwd, bwd, axis=0)
                       == jnp.arange(T)[:, None])
        assert jnp.allclose(out, ref, rtol=1e-4, atol=1e-6), \
            f"Pallas gather mismatch vs reference for shape {(T, B, C)}"

    # Multi-group path: g = 8, grid of 2 "parallel" steps (exercises blocking).
    run_case(T=16, B=16, C=128, ratio=0.75, key=jax.random.fold_in(root_key, 0))
    # Single full-extent-group fallback (B not a multiple of 8).
    run_case(T=16, B=4, C=128, ratio=0.75, key=jax.random.fold_in(root_key, 1))

    print("KERNEL_OK")
</pallas_src>

<mosaic_0001>
module attributes {stable_mosaic.version = 11 : i64} {
  func.func @_onehot_gather_kernel(%arg0: i32, %arg1: memref<32x1xi32, #tpu.memory_space<vmem>>, %arg2: memref<16x8x128xf32, #tpu.memory_space<vmem>>, %arg3: memref<4x8x128xf32, #tpu.memory_space<vmem>>) attributes {dimension_semantics = [#tpu.dimension_semantics<parallel>], iteration_bounds = array<i64: 2>, scalar_prefetch = 0 : i64, scratch_operands = 0 : i64, tpu.core_type = #tpu.core_type<tc>, window_params = [{transform_indices = @transform_0, window_bounds = array<i64: 32, 1>}, {transform_indices = @transform_1, window_bounds = array<i64: 16, 8, 128>}, {transform_indices = @transform_2, window_bounds = array<i64: 4, 8, 128>}]} {
    %c0 = arith.constant 0 : index
    %c0_0 = arith.constant 0 : index
    %c0_1 = arith.constant 0 : index
    %0 = vector.load %arg2[%c0, %c0_0, %c0_1] : memref<16x8x128xf32, #tpu.memory_space<vmem>>, vector<16x8x128xf32>
    %1 = vector.shape_cast %0 : vector<16x8x128xf32> to vector<128x128xf32>
    %2 = tpu.iota {dimensions = array<i32: 1>} : vector<1x128xi32>
    %c0_2 = arith.constant 0 : index
    %c0_3 = arith.constant 0 : index
    %3 = vector.load %arg1[%c0_2, %c0_3] : memref<32x1xi32, #tpu.memory_space<vmem>>, vector<32x1xi32>
    %4 = vector.broadcast %2 : vector<1x128xi32> to vector<32x128xi32>
    %5 = vector.broadcast %3 : vector<32x1xi32> to vector<32x128xi32>
    %6 = arith.cmpi eq, %4, %5 : vector<32x128xi32>
    %7 = arith.extui %6 : vector<32x128xi1> to vector<32x128xi32>
    %8 = arith.sitofp %7 : vector<32x128xi32> to vector<32x128xf32>
    %cst = arith.constant dense<0.000000e+00> : vector<32x128xf32>
    %9 = tpu.matmul %8, %1, %cst {dimension_numbers = #tpu.dot_dimension_numbers<[1], [0], [0], [1], [0, 0, 1, 1], [], []>, precision = #tpu.contract_precision<fp32>} : vector<32x128xf32>, vector<128x128xf32>, vector<32x128xf32> -> vector<32x128xf32>
    %10 = vector.shape_cast %9 : vector<32x128xf32> to vector<4x8x128xf32>
    %c0_4 = arith.constant 0 : index
    %c0_5 = arith.constant 0 : index
    %c0_6 = arith.constant 0 : index
    %11 = vector.load %arg3[%c0_4, %c0_5, %c0_6] : memref<4x8x128xf32, #tpu.memory_space<vmem>>, vector<4x8x128xf32>
    tpu.vector_store %arg3[%c0_4, %c0_5, %c0_6], %10 {strides = array<i32>} : memref<4x8x128xf32, #tpu.memory_space<vmem>>, vector<4x8x128xf32>,
    return
  }
  func.func @transform_0(%arg0: i32) -> (i32, i32) {
    %c0_i32 = arith.constant 0 : i32
    %c0_i32_0 = arith.constant 0 : i32
    return %arg0, %c0_i32 : i32, i32
  }
  func.func @transform_1(%arg0: i32) -> (i32, i32, i32) {
    %c0_i32 = arith.constant 0 : i32
    %c0_i32_0 = arith.constant 0 : i32
    %c0_i32_1 = arith.constant 0 : i32
    return %c0_i32, %arg0, %c0_i32_0 : i32, i32, i32
  }
  func.func @transform_2(%arg0: i32) -> (i32, i32, i32) {
    %c0_i32 = arith.constant 0 : i32
    %c0_i32_0 = arith.constant 0 : i32
    %c0_i32_1 = arith.constant 0 : i32
    return %c0_i32, %arg0, %c0_i32_0 : i32, i32, i32
  }
}

</mosaic_0001>

<bundles_post_ra>
// kernel: tpu_custom_call.1
= control target key start
LH: loop header
LB: loop body
LE: loop exit
PB: predicated region body
PF: predicated region fallthrough
CT: control target
= control target key end

     0   :  { %7 = vsyncpa [#allocation3], 0  ;;  %s1366_s0 = inlined_call_operand.vmem [shape: s32[64,1], index: 0, kind: input, shape index: {}]   ;;  %s1367_s1 = inlined_call_operand.hbm [shape: f32[16,16,128], index: 1, kind: input, shape index: {}]   ;;  %s1368_s2 = inlined_call_operand.hbm [shape: f32[4,16,128], index: 2, kind: output, shape index: {}]  }
   0x1   :  { %9 = vsyncpa [#allocation3 + $0x1], 0 }
   0x2   :  { %10 = vsyncpa [#allocation4], 0 }
   0x3   :  { %12 = vsyncpa [#allocation4 + $0x1], 0  ;;  %s1010_s9 = smov 0   ;;  %s1012_s10 = smov 0  }
   0x4   :  { %s1014_s11 = smov 0   ;;  %s1016_s12 = smov 0  }
   0x5 LB: > { %s1031_s13 = sadd.s32 4294967295, %s984_s12   ;;  %s769_s14 = sadd.s32 4294967294, %s984_s12   ;;  %s984_s12 = sphi %s1016_s12, %s1377_s12   ;;  %s980_s11 = sphi %s1014_s11, %s1376_s11   ;;  %s976_s10 = sphi %s1012_s10, %s1375_s10   ;;  %s972_s9 = sphi %s1010_s9, %s1374_s9  }
   0x6   : > { %s1035_s15 = sadd.s32 1, %s984_s12   ;;  %s51_s16 = sadd.s32 1, %s980_s11 }
   0x7   : > { %s48_s17 = ssub.s32 %s984_s12, %s1035_s15  ;;  %p58_p0 = scmp.ne.s32.totalorder %s980_s11, %s976_s10 }
   0x8   : > { %p49_p1 = scmp.eq.s32.totalorder %s48_s17, 0  ;;  %p59_p2 = scmp.eq.s32.totalorder %s984_s12, 0 }
   0x9   : > { %p64_p3 = scmp.ne.s32.totalorder %s976_s10, %s972_s9  ;;  %p65_p4 = scmp.eq.s32.totalorder %s1031_s13, 0 }
   0xa   : > { %s1047_s18 = scalar_select %p49_p1, %s980_s11, %s51_s16  }
   0xb   : > { %p1049_p5 = por %p59_p2, %p58_p0  ;;  %p1053_p6 = por %p65_p4, %p64_p3 }
   0xc   : > { %p88_p7 = scmp.eq.s32.totalorder %s1031_s13, 1  ;;  %p94_p8 = scmp.eq.s32.totalorder %s769_s14, 1 }
   0xd   : > { %p771_p9 = scmp.ge.s32.totalorder %s984_s12, 2  ;;  %p843_p10 = scmp.lt.s32.totalorder %s984_s12, 2 }
   0xe   : > { %p1060_p11 = por %p88_p7, %p58_p0  ;;  %p1064_p12 = por %p94_p8, %p64_p3 }
   0xf   : > { %s123_s23 = sand.u32 1, %s980_s11   ;;  %s773_s24 = sshll.u32 %s984_s12, 3 }
  0x10   : > { %s772_s25 = sshll.u32 %s123_s23, 7  ;;  %s131_s28 = scalar_lea.hbm %s1367_s1, %s773_s24 }
  0x11   : > { %s132_s29 = sshll.u32 %s131_s28, 4  ;;  %s127_s30 = scalar_lea.vmem [#allocation2], %s772_s25  ;;  %s133_s29 = int_to_ptr.hbm [resolvable:$true] %s132_s29 }
  0x12   : > { %s134_s3 = sshll.u32 %s127_s30, 4  ;;  %p1075_p13 = pnand %p843_p10, %p1049_p5  ;;  %s135_s3 = int_to_ptr.vmem [resolvable:$true] %s134_s3 }
  0x13   : > { %p774_p0 = scmp.ge.s32.totalorder %s984_s12, 1  ;;  %s124_s5 = scalar_lea.sflag [#allocation3], %s123_s23 }
  0x14   : > { %s888_s6 = sshra.s32 %s133_s29, 4  ;;  %p892_p2 = pneg %p1075_p13  ;;  %s889_s6 = int_to_ptr.hbm [resolvable:$true] %s888_s6 }
  0x15   : > { %s890_s7 = scalar_lea.hbm %s889_s6, 128  ;;  %s895_s16 = scalar_lea.hbm %s1367_s1, 256 }
  0x16   : > { %p891_p1 = scmp.ne.s32.totalorder %s889_s6, %s890_s7  ;;  %p896_p5 = scmp.lt.s32.totalorder %s889_s6, %s1367_s1 }
  0x17   : > { %p897_p7 = scmp.lt.s32.totalorder %s895_s16, %s890_s7 }
  0x18   : > { %p893_p3 = pnand %p892_p2, %p891_p1 }
  0x19   : > { %p898_p8 = por %p897_p7, %p896_p5 }
  0x1a   : > { %p894_p4 = pneg %p893_p3 }
  0x1c   : > { %p899_p10 = pnand %p898_p8, %p894_p4 }
  0x1e   : > { %902 = shalt.err (!%p899_p10)
}
  0x1f   : > { %s986_s23 = smov 256   ;;  %s987_s24 = smov 128  }
  0x20   : > { %s988_s25 = smov 8   ;;  %p142_p1 = scmp.lt.s32.totalorder %s984_s12, 3 }
  0x21   : > { %838 = dma.hbm_to_vmem [thread:$0]  (!%p1075_p13), %s133_s29, 2048, %s135_s3, %s124_s5, %s986_s23, %s987_s24, %s988_s25  }
  0x22   : > { %p143_p2 = pnand %p774_p0, %p142_p1 }
  0x23   : > { %s1094_s26 = sand.u32 (!%p143_p2), 1, %s976_s10  }
  0x24   : > { %146 = sbr.rel (%p143_p2) target bundleno = 350 (0x15e), region = 28  ;;  %s775_s27 = sshll.u32 (!%p143_p2), %s1094_s26, 7 }
  0x25   : > { %s149_s28 = scalar_lea.sflag (!%p143_p2), [#allocation3], %s1094_s26  ;;  %s1098_s30 = scalar_lea.vmem (!%p143_p2), [#allocation2], %s775_s27 }
  0x29   : > { %963 = dma.done.wait (%p1053_p6), %s149_s28, 2048  }
  0x2a   : > { %965 = vsyncadd (%p1053_p6), %s149_s28, 4294965248  ;;  %s777_s29 = sshll.u32 %s1031_s13, 2  ;;  %v989_v0 = vmov 0   ;;  %v200_v3 = vld [vmem:[%s1098_s30 + $0x78] sm:$0xff]  ;;  %v199_v4 = vld [vmem:[%s1098_s30 + $0x70] sm:$0xff]  ;;  %s776_s20 = sshll.u32 %s1094_s26, 5 }
  0x2b   : > { %886 = vset.pattern.permute.xlu0 %v989_v0  ;;  %p180_p13 = scmp.lt.s32.totalorder %s777_s29, 7  ;;  %887 = vset.pattern.permute.xlu1 %v989_v0  ;;  %v1110_v5 = vand.u32 4294901760, %v200_v3  ;;  %v1112_v6 = vand.u32 4294901760, %v199_v4  ;;  %v198_v7 = vld [vmem:[%s1098_s30 + $0x68] sm:$0xff]  ;;  %v197_v8 = vld [vmem:[%s1098_s30 + $0x60] sm:$0xff]  ;;  %v196_v9 = vld [vmem:[%s1098_s30 + $0x58] sm:$0xff] }
  0x2c   : > { %v1117_v10 = vand.u32 4294901760, %v198_v7  ;;  %v1119_v11 = vand.u32 4294901760, %v197_v8  ;;  %v1121_v12 = vand.u32 4294901760, %v196_v9  ;;  %v195_v13 = vld [vmem:[%s1098_s30 + $0x50] sm:$0xff]  ;;  %v194_v14 = vld [vmem:[%s1098_s30 + $0x48] sm:$0xff]  ;;  %v193_v15 = vld [vmem:[%s1098_s30 + $0x40] sm:$0xff] }
  0x2d   : > { %s1379_s29 = smov (!%p180_p13, %s777_s29), 7  ;;  %v297_v16 = vsub.f32 %v200_v3, %v1110_v5  ;;  %v303_v17 = vsub.f32 %v199_v4, %v1112_v6  ;;  %479 = vmatpush.msra.mxu3 %v1110_v5  ;;  %232 = vmatpush.msra.mxu0 %v1110_v5  ;;  %v1130_v18 = vand.u32 4294901760, %v195_v13  ;;  %v1132_v19 = vand.u32 4294901760, %v194_v14  ;;  %v192_v38 = vld [vmem:[%s1098_s30 + $0x38] sm:$0xff]  ;;  %v191_v39 = vld [vmem:[%s1098_s30 + $0x30] sm:$0xff]  ;;  %v190_v43 = vld [vmem:[%s1098_s30 + $0x28] sm:$0xff] }
  0x2e   : > { %s778_s3 = sshll.u32 %s1379_s29, 3  ;;  %v309_v20 = vsub.f32 %v198_v7, %v1117_v10  ;;  %v315_v21 = vsub.f32 %v197_v8, %v1119_v11  ;;  %v321_v22 = vsub.f32 %v196_v9, %v1121_v12  ;;  %v1137_v23 = vand.u32 4294901760, %v193_v15  ;;  %v189_v45 = vld [vmem:[%s1098_s30 + $0x20] sm:$0xff]  ;;  %v188_v53 = vld [vmem:[%s1098_s30 + $0x18] sm:$0xff]  ;;  %v187_v59 = vld [vmem:[%s1098_s30 + $0x10] sm:$0xff]  ;;  %s796_s7 = sshll.u32 %s1031_s13, 3 }
  0x2f   : > { %s183_s6 = scalar_lea.vmem %s1366_s0, %s778_s3  ;;  %v1139_v26 = vand.u32 4294901760, %v297_v16  ;;  %v1141_v27 = vand.u32 4294901760, %v303_v17  ;;  %411 = vmatpush.msra.mxu2 %v297_v16  ;;  %481 = vmatpush.msra.mxu3 %v1112_v6  ;;  %v327_v28 = vsub.f32 %v195_v13, %v1130_v18  ;;  %v333_v31 = vsub.f32 %v194_v14, %v1132_v19  ;;  %s178_s8 = scalar_lea.vmem [#allocation5], %s776_s20 }
  0x30   : > { %v203_v1 = vld [vmem:[%s183_s6] sm:$0xff]  ;;  %v205_v2 = vld [vmem:[%s183_s6 + $0x10] sm:$0xff]  ;;  %v204_v24 = vld [vmem:[%s183_s6 + $0x8] sm:$0xff]  ;;  %v1145_v29 = vand.u32 4294901760, %v309_v20  ;;  %v1147_v30 = vand.u32 4294901760, %v315_v21  ;;  %234 = vmatpush.msra.mxu0 %v1112_v6  ;;  %v1153_v34 = vand.u32 4294901760, %v321_v22  ;;  %v339_v37 = vsub.f32 %v193_v15, %v1137_v23  ;;  %s680_s17 = scalar_lea.hbm %s1368_s2, %s796_s7 }
  0x31   : > { %208 = vperm.xlu0 %886, %v203_v1   ;;  %214 = vperm.xlu1 %887, %v205_v2   ;;  %v206_v25 = vld [vmem:[%s183_s6 + $0x18] sm:$0xff]  ;;  %v299_v32 = vsub.f32 %v297_v16, %v1139_v26  ;;  %v305_v33 = vsub.f32 %v303_v17, %v1141_v27  ;;  %v1157_v36 = vand.u32 4294901760, %v327_v28  ;;  %v1165_v44 = vand.u32 4294901760, %v333_v31  ;;  %v186_v1 = vld [vmem:[%s1098_s30 + $0x8] sm:$0xff]  ;;  %s681_s19 = sshll.u32 %s178_s8, 4  ;;  %s683_s23 = sshll.u32 %s680_s17, 4  ;;  %s682_s19 = int_to_ptr.vmem [resolvable:$true] %s681_s19  ;;  %s684_s23 = int_to_ptr.hbm [resolvable:$true] %s683_s23 }
  0x32   : > { %414 = vmatpush.msra.mxu2 %v303_v17  ;;  %483 = vmatpush.msra.mxu3 %v1117_v10  ;;  %v311_v35 = vsub.f32 %v309_v20, %v1145_v29  ;;  %v317_v42 = vsub.f32 %v315_v21, %v1147_v30  ;;  %v323_v47 = vsub.f32 %v321_v22, %v1153_v34  ;;  %v1170_v48 = vand.u32 4294901760, %v192_v38  ;;  %s670_s13 = scalar_lea.sflag [#allocation4], %s1094_s26  ;;  %s932_s24 = sshra.s32 %s684_s23, 4  ;;  %s933_s24 = int_to_ptr.hbm [resolvable:$true] %s932_s24 }
  0x33   : > { %v300_v40 = vand.u32 4294901760, %v299_v32  ;;  %v306_v41 = vand.u32 4294901760, %v305_v33  ;;  %236 = vmatpush.msra.mxu0 %v1117_v10  ;;  %v1172_v49 = vand.u32 4294901760, %v191_v39  ;;  %v329_v50 = vsub.f32 %v327_v28, %v1157_v36  ;;  %s934_s25 = scalar_lea.hbm %s933_s24, 32  ;;  %p939_p4 = scmp.lt.s32.totalorder %s933_s24, %s1368_s2 }
  0x34   : > { %417 = vmatpush.msra.mxu2 %v309_v20  ;;  %485 = vmatpush.msra.mxu3 %v1119_v11  ;;  %v312_v46 = vand.u32 4294901760, %v311_v35  ;;  %v1176_v51 = vand.u32 4294901760, %v339_v37  ;;  %v1179_v52 = vand.u32 4294901760, %v190_v43  ;;  %v318_v54 = vand.u32 4294901760, %v317_v42  ;;  %p935_p6 = scmp.ne.s32.totalorder %s933_s24, %s934_s25 }
  0x35   : > { %301 = vmatpush.msra.mxu1 %v300_v40  ;;  %238 = vmatpush.msra.mxu0 %v1119_v11  ;;  %v345_v55 = vsub.f32 %v192_v38, %v1170_v48  ;;  %v351_v56 = vsub.f32 %v191_v39, %v1172_v49  ;;  %v1184_v57 = vand.u32 4294901760, %v189_v45  ;;  %v335_v58 = vsub.f32 %v333_v31, %v1165_v44 }
  0x36   : > { %420 = vmatpush.msra.mxu2 %v315_v21  ;;  %487 = vmatpush.msra.mxu3 %v1121_v12  ;;  %v324_v60 = vand.u32 4294901760, %v323_v47  ;;  %v357_v62 = vsub.f32 %v190_v43, %v1179_v52  ;;  %v1193_v63 = vand.u32 4294901760, %v188_v53  ;;  %v341_v0 = vsub.f32 %v339_v37, %v1176_v51  ;;  %p936_p0 = pnand %p935_p6, %p1060_p11 }
  0x37   : > { %307 = vmatpush.msra.mxu1 %v306_v41  ;;  %240 = vmatpush.msra.mxu0 %v1121_v12  ;;  %v1190_v61 = vand.u32 4294901760, %v345_v55  ;;  %v330_v2 = vand.u32 4294901760, %v329_v50  ;;  %v1199_v3 = vand.u32 4294901760, %v351_v56  ;;  %v363_v4 = vsub.f32 %v189_v45, %v1184_v57 }
  0x38   : > { %423 = vmatpush.msra.mxu2 %v321_v22  ;;  %489 = vmatpush.msra.mxu3 %v1130_v18  ;;  %v1202_v7 = vand.u32 4294901760, %v187_v59  ;;  %v336_v8 = vand.u32 4294901760, %v335_v58  ;;  %v1207_v13 = vand.u32 4294901760, %v357_v62  ;;  %v369_v14 = vsub.f32 %v188_v53, %v1193_v63  ;;  %p937_p3 = pneg %p936_p0 }
  0x39   : > { %211 = vperm.xlu0 %886, %v204_v24   ;;  %217 = vperm.xlu1 %887, %v206_v25   ;;  %v347_v9 = vsub.f32 %v345_v55, %v1190_v61  ;;  %v1210_v15 = vand.u32 4294901760, %v186_v1  ;;  %v342_v16 = vand.u32 4294901760, %v341_v0  ;;  %v353_v17 = vsub.f32 %v351_v56, %v1199_v3 }
  0x3a   : > { %313 = vmatpush.msra.mxu1 %v312_v46  ;;  %426 = vmatpush.msra.mxu2 %v327_v28  ;;  %v1215_v20 = vand.u32 4294901760, %v363_v4  ;;  %v375_v21 = vsub.f32 %v187_v59, %v1202_v7  ;;  %v359_v24 = vsub.f32 %v357_v62, %v1207_v13  ;;  %v1221_v25 = vand.u32 4294901760, %v369_v14  ;;  %v185_v46 = vld [vmem:[%s1098_s30] sm:$0xff]  ;;  %s938_s30 = scalar_lea.hbm %s1368_s2, 64 }
  0x3b   : > { %491 = vmatpush.msra.mxu3 %v1132_v19  ;;  %242 = vmatpush.msra.mxu0 %v1130_v18  ;;  %v348_v22 = vand.u32 4294901760, %v347_v9  ;;  %v381_v28 = vsub.f32 %v186_v1, %v1210_v15  ;;  %v1244_v47 = vand.u32 4294901760, %v185_v46  ;;  %p940_p5 = scmp.lt.s32.totalorder %s938_s30, %s934_s25 }
  0x3c   : > { %319 = vmatpush.msra.mxu1 %v318_v54  ;;  %429 = vmatpush.msra.mxu2 %v333_v31  ;;  %v354_v31 = vand.u32 4294901760, %v353_v17  ;;  %v365_v32 = vsub.f32 %v363_v4, %v1215_v20  ;;  %v1227_v33 = vand.u32 4294901760, %v375_v21  ;;  %v360_v35 = vand.u32 4294901760, %v359_v24 }
  0x3d   : > { %493 = vmatpush.msra.mxu3 %v1137_v23  ;;  %244 = vmatpush.msra.mxu0 %v1132_v19  ;;  %v1232_v38 = vand.u32 4294901760, %v381_v28  ;;  %v387_v50 = vsub.f32 %v185_v46, %v1244_v47  ;;  %p941_p7 = por %p940_p5, %p939_p4 }
  0x3e   : > { %325 = vmatpush.msra.mxu1 %v324_v60  ;;  %432 = vmatpush.msra.mxu2 %v339_v37  ;;  %v371_v37 = vsub.f32 %v369_v14, %v1221_v25  ;;  %v366_v39 = vand.u32 4294901760, %v365_v32  ;;  %v377_v40 = vsub.f32 %v375_v21, %v1227_v33 }
  0x3f   : > { %495 = vmatpush.msra.mxu3 %v1170_v48  ;;  %246 = vmatpush.msra.mxu0 %v1137_v23  ;;  %v383_v42 = vsub.f32 %v381_v28, %v1232_v38  ;;  %v1251_v53 = vand.u32 4294901760, %v387_v50  ;;  %p942_p8 = pnand %p941_p7, %p937_p3 }
  0x40   : > { %331 = vmatpush.msra.mxu1 %v330_v2  ;;  %435 = vmatpush.msra.mxu2 %v345_v55  ;;  %v372_v41 = vand.u32 4294901760, %v371_v37  ;;  %v378_v43 = vand.u32 4294901760, %v377_v40 }
  0x41   : > { %497 = vmatpush.msra.mxu3 %v1172_v49  ;;  %248 = vmatpush.msra.mxu0 %v1170_v48  ;;  %v384_v45 = vand.u32 4294901760, %v383_v42  ;;  %v389_v54 = vsub.f32 %v387_v50, %v1251_v53 }
  0x42   : > { %337 = vmatpush.msra.mxu1 %v336_v8  ;;  %438 = vmatpush.msra.mxu2 %v351_v56 }
  0x43   : > { %499 = vmatpush.msra.mxu3 %v1179_v52  ;;  %250 = vmatpush.msra.mxu0 %v1172_v49  ;;  %v390_v55 = vand.u32 4294901760, %v389_v54 }
  0x44   : > { %343 = vmatpush.msra.mxu1 %v342_v16  ;;  %441 = vmatpush.msra.mxu2 %v357_v62 }
  0x45   : > { %501 = vmatpush.msra.mxu3 %v1184_v57  ;;  %252 = vmatpush.msra.mxu0 %v1179_v52 }
  0x46   : > { %349 = vmatpush.msra.mxu1 %v348_v22  ;;  %444 = vmatpush.msra.mxu2 %v363_v4 }
  0x47   : > { %503 = vmatpush.msra.mxu3 %v1193_v63  ;;  %254 = vmatpush.msra.mxu0 %v1184_v57 }
  0x48   : > { %355 = vmatpush.msra.mxu1 %v354_v31  ;;  %447 = vmatpush.msra.mxu2 %v369_v14 }
  0x49   : > { %505 = vmatpush.msra.mxu3 %v1202_v7  ;;  %256 = vmatpush.msra.mxu0 %v1193_v63 }
  0x4a   : > { %361 = vmatpush.msra.mxu1 %v360_v35  ;;  %450 = vmatpush.msra.mxu2 %v375_v21 }
  0x4b   : > { %507 = vmatpush.msra.mxu3 %v1210_v15  ;;  %258 = vmatpush.msra.mxu0 %v1202_v7 }
  0x4c   : > { %367 = vmatpush.msra.mxu1 %v366_v39  ;;  %453 = vmatpush.msra.mxu2 %v381_v28 }
  0x4d   : > { %260 = vmatpush.msra.mxu0 %v1210_v15  ;;  %509 = vmatpush.msra.mxu3 %v1244_v47 }
  0x4e   : > { %373 = vmatpush.msra.mxu1 %v372_v41  ;;  %456 = vmatpush.msra.mxu2 %v387_v50 }
  0x4f   : > { %262 = vmatpush.msra.mxu0 %v1244_v47  ;;  %815 = vmatpush.msrb.mxu3 %v1110_v5 }
  0x50   : > { %379 = vmatpush.msra.mxu1 %v378_v43  ;;  %799 = vmatpush.msrb.mxu2 %v1139_v26 }
  0x51   : > { %538 = vmatpush.msrb.mxu0 %v1139_v26  ;;  %816 = vmatpush.msrb.mxu3 %v1112_v6 }
  0x52   : > { %385 = vmatpush.msra.mxu1 %v384_v45  ;;  %800 = vmatpush.msrb.mxu2 %v1141_v27 }
  0x53   : > { %542 = vmatpush.msrb.mxu0 %v1141_v27  ;;  %817 = vmatpush.msrb.mxu3 %v1117_v10 }
  0x54   : > { %801 = vmatpush.msrb.mxu2 %v1145_v29  ;;  %391 = vmatpush.msra.mxu1 %v390_v55 }
  0x55   : > { %546 = vmatpush.msrb.mxu0 %v1145_v29  ;;  %818 = vmatpush.msrb.mxu3 %v1119_v11 }
  0x56   : > { %617 = vmatpush.msrb.mxu1 %v1110_v5  ;;  %802 = vmatpush.msrb.mxu2 %v1147_v30  ;;  %v201_v5 = vlaneseq }
  0x57   : > { %550 = vmatpush.msrb.mxu0 %v1147_v30  ;;  %819 = vmatpush.msrb.mxu3 %v1121_v12 }
  0x58   : > { %619 = vmatpush.msrb.mxu1 %v1112_v6  ;;  %803 = vmatpush.msrb.mxu2 %v1153_v34  ;;  %v202_v6 = vand.u32 127, %v201_v5 }
  0x59   : > { %554 = vmatpush.msrb.mxu0 %v1153_v34  ;;  %820 = vmatpush.msrb.mxu3 %v1130_v18 }
  0x5a   : > { %621 = vmatpush.msrb.mxu1 %v1117_v10  ;;  %804 = vmatpush.msrb.mxu2 %v1157_v36 }
  0x5b   : > { %558 = vmatpush.msrb.mxu0 %v1157_v36  ;;  %821 = vmatpush.msrb.mxu3 %v1132_v19 }
  0x5c   : > { %623 = vmatpush.msrb.mxu1 %v1119_v11  ;;  %805 = vmatpush.msrb.mxu2 %v1165_v44  ;;  %v990_v11 = vmov 1.0  }
  0x5d   : > { %562 = vmatpush.msrb.mxu0 %v1165_v44  ;;  %822 = vmatpush.msrb.mxu3 %v1137_v23 }
  0x5e   : > { %625 = vmatpush.msrb.mxu1 %v1121_v12  ;;  %806 = vmatpush.msrb.mxu2 %v1176_v51  ;;  %v991_v12 = vmov 0.0  }
  0x5f   : > { %566 = vmatpush.msrb.mxu0 %v1176_v51  ;;  %823 = vmatpush.msrb.mxu3 %v1170_v48 }
  0x60   : > { %627 = vmatpush.msrb.mxu1 %v1130_v18  ;;  %807 = vmatpush.msrb.mxu2 %v1190_v61 }
  0x61   : > { %570 = vmatpush.msrb.mxu0 %v1190_v61  ;;  %824 = vmatpush.msrb.mxu3 %v1172_v49 }
  0x62   : > { %629 = vmatpush.msrb.mxu1 %v1132_v19  ;;  %808 = vmatpush.msrb.mxu2 %v1199_v3 }
  0x63   : > { %574 = vmatpush.msrb.mxu0 %v1199_v3  ;;  %825 = vmatpush.msrb.mxu3 %v1179_v52 }
  0x64   : > { %631 = vmatpush.msrb.mxu1 %v1137_v23  ;;  %809 = vmatpush.msrb.mxu2 %v1207_v13 }
  0x65   : > { %578 = vmatpush.msrb.mxu0 %v1207_v13  ;;  %826 = vmatpush.msrb.mxu3 %v1184_v57 }
  0x66   : > { %633 = vmatpush.msrb.mxu1 %v1170_v48  ;;  %810 = vmatpush.msrb.mxu2 %v1215_v20 }
  0x67   : > { %582 = vmatpush.msrb.mxu0 %v1215_v20  ;;  %827 = vmatpush.msrb.mxu3 %v1193_v63 }
  0x68   : > { %635 = vmatpush.msrb.mxu1 %v1172_v49  ;;  %811 = vmatpush.msrb.mxu2 %v1221_v25 }
  0x69   : > { %586 = vmatpush.msrb.mxu0 %v1221_v25  ;;  %828 = vmatpush.msrb.mxu3 %v1202_v7 }
  0x6a   : > { %637 = vmatpush.msrb.mxu1 %v1179_v52  ;;  %812 = vmatpush.msrb.mxu2 %v1227_v33 }
  0x6b   : > { %590 = vmatpush.msrb.mxu0 %v1227_v33  ;;  %829 = vmatpush.msrb.mxu3 %v1210_v15 }
  0x6c   : > { %639 = vmatpush.msrb.mxu1 %v1184_v57  ;;  %813 = vmatpush.msrb.mxu2 %v1232_v38 }
  0x6d   : > { %594 = vmatpush.msrb.mxu0 %v1232_v38  ;;  %830 = vmatpush.msrb.mxu3 %v1244_v47 }
  0x6e   : > { %641 = vmatpush.msrb.mxu1 %v1193_v63  ;;  %814 = vmatpush.msrb.mxu2 %v1251_v53 }
  0x6f   : > { %598 = vmatpush.msrb.mxu0 %v1251_v53 }
  0x70   : > { %643 = vmatpush.msrb.mxu1 %v1202_v7 }
  0x72   : > { %645 = vmatpush.msrb.mxu1 %v1210_v15 }
  0x74   : > { %647 = vmatpush.msrb.mxu1 %v1244_v47 }
  0xa3   : > { %v209_v10 = vpop.permute.xlu0 %208  ;;  %v215_v19 = vpop.permute.xlu1 %214 }
  0xa4   : > { %vm219_vm0 = vcmp.eq.s32.totalorder %v202_v6, %v209_v10  ;;  %vm221_vm1 = vcmp.eq.s32.totalorder %v202_v6, %v215_v19 }
  0xa5   : > { %783 = vmatmul.msk.f32.vlgmr.msra.gmra.mxu1 %vm219_vm0, %v990_v11  ;;  %v779_v18 = vsel %vm219_vm0, 1.0, %v991_v12  ;;  %v781_v36 = vsel %vm221_vm1, 1.0, %v991_v12 }
  0xa6   : > { %v264_v23 = vsub.f32 %v779_v18, %v779_v18  ;;  %v280_v51 = vsub.f32 %v781_v36, %v781_v36 }
  0xa8   : > { %459 = vmatmul.f32.vlgmr.msra.gmra.mxu2 %v264_v23  ;;  %v265_v26 = vand.u32 4294901760, %v264_v23  ;;  %v281_v57 = vand.u32 4294901760, %v280_v51 }
  0xaa   : > { %513 = vmatmul.f32.vlgmr.msra.gmra.mxu3 %v265_v26  ;;  %v266_v27 = vsub.f32 %v264_v23, %v265_v26  ;;  %v282_v59 = vsub.f32 %v280_v51, %v281_v57 }
  0xab   : > { %v212_v29 = vpop.permute.xlu0 %211  ;;  %v218_v48 = vpop.permute.xlu1 %217 }
  0xac   : > { %vm220_vm2 = vcmp.eq.s32.totalorder %v202_v6, %v212_v29  ;;  %v267_v30 = vand.u32 4294901760, %v266_v27  ;;  %vm222_vm3 = vcmp.eq.s32.totalorder %v202_v6, %v218_v48  ;;  %v283_v61 = vand.u32 4294901760, %v282_v59 }
  0xad   : > { %784 = vmatmul.msk.f32.gmra.mxu1 %vm220_vm2, %v990_v11  ;;  %v780_v34 = vsel %vm220_vm2, 1.0, %v991_v12  ;;  %v782_v58 = vsel %vm222_vm3, 1.0, %v991_v12 }
  0xae   : > { %268 = vmatmul.f32.vlgmr.msra.gmra.mxu0 %v267_v30  ;;  %v272_v44 = vsub.f32 %v780_v34, %v780_v34  ;;  %v288_v60 = vsub.f32 %v782_v58, %v782_v58 }
  0xb0   : > { %464 = vmatmul.f32.gmra.mxu2 %v272_v44  ;;  %v273_v49 = vand.u32 4294901760, %v272_v44  ;;  %v289_v62 = vand.u32 4294901760, %v288_v60 }
  0xb2   : > { %519 = vmatmul.f32.gmra.mxu3 %v273_v49  ;;  %v274_v52 = vsub.f32 %v272_v44, %v273_v49  ;;  %v290_v63 = vsub.f32 %v288_v60, %v289_v62 }
  0xb4   : > { %v275_v56 = vand.u32 4294901760, %v274_v52  ;;  %v291_v0 = vand.u32 4294901760, %v290_v63 }
  0xb5   : > { %785 = vmatmul.msk.f32.gmra.mxu1 %vm221_vm1, %v990_v11 }
  0xb6   : > { %276 = vmatmul.f32.gmra.mxu0 %v275_v56 }
  0xb8   : > { %469 = vmatmul.f32.gmra.mxu2 %v280_v51 }
  0xba   : > { %525 = vmatmul.f32.gmra.mxu3 %v281_v57 }
  0xbd   : > { %786 = vmatmul.msk.f32.gmra.mxu1 %vm222_vm3, %v990_v11 }
  0xbe   : > { %284 = vmatmul.f32.gmra.mxu0 %v283_v61 }
  0xc0   : > { %474 = vmatmul.f32.gmra.mxu2 %v288_v60 }
  0xc2   : > { %531 = vmatmul.f32.gmra.mxu3 %v289_v62 }
  0xc5   : > { %791 = vmatmul.msk.f32.vlgmr.msrb.gmra.mxu1 %vm219_vm0, %v990_v11 }
  0xc6   : > { %292 = vmatmul.f32.gmra.mxu0 %v291_v0 }
  0xc8   : > { %789 = vmatmul.msk.f32.vlgmr.msrb.gmra.mxu2 %vm221_vm1, %v990_v11 }
  0xca   : > { %793 = vmatmul.msk.f32.vlgmr.msrb.gmra.mxu3 %vm221_vm1, %v990_v11 }
  0xcd   : > { %792 = vmatmul.msk.f32.gmra.mxu1 %vm220_vm2, %v990_v11 }
  0xce   : > { %787 = vmatmul.msk.f32.vlgmr.msrb.gmra.mxu0 %vm219_vm0, %v990_v11 }
  0xd0   : > { %790 = vmatmul.msk.f32.gmra.mxu2 %vm222_vm3, %v990_v11 }
  0xd2   : > { %794 = vmatmul.msk.f32.gmra.mxu3 %vm222_vm3, %v990_v11 }
  0xd6   : > { %788 = vmatmul.msk.f32.gmra.mxu0 %vm220_vm2, %v990_v11 }
 0x122   : > { %v394_v1 = vpop.f32.mrf.mxu1 }
 0x12a   : > { %v398_v4 = vpop.f32.mrf.mxu1 }
 0x12b   : > { %v269_v2 = vpop.f32.mrf.mxu0  ;;  %v460_v3 = vpop.f32.mrf.mxu2 }
 0x12c   : > { %v395_v21 = vadd.f32 %v394_v1, %v269_v2 }
 0x12d   : > { %v514_v7 = vpop.f32.mrf.mxu3 }
 0x12e   : > { %v461_v31 = vadd.f32 %v460_v3, %v395_v21 }
 0x130   : > { %v515_v33 = vadd.f32 %v514_v7, %v461_v31 }
 0x132   : > { %v402_v14 = vpop.f32.mrf.mxu1 }
 0x133   : > { %v277_v8 = vpop.f32.mrf.mxu0  ;;  %v465_v9 = vpop.f32.mrf.mxu2 }
 0x134   : > { %v399_v35 = vadd.f32 %v398_v4, %v277_v8 }
 0x135   : > { %v520_v13 = vpop.f32.mrf.mxu3 }
 0x136   : > { %v466_v46 = vadd.f32 %v465_v9, %v399_v35 }
 0x138   : > { %v521_v54 = vadd.f32 %v520_v13, %v466_v46 }
 0x13a   : > { %v406_v20 = vpop.f32.mrf.mxu1 }
 0x13b   : > { %v285_v15 = vpop.f32.mrf.mxu0  ;;  %v470_v16 = vpop.f32.mrf.mxu2 }
 0x13c   : > { %v403_v22 = vadd.f32 %v402_v14, %v285_v15 }
 0x13d   : > { %v526_v17 = vpop.f32.mrf.mxu3 }
 0x13e   : > { %v471_v32 = vadd.f32 %v470_v16, %v403_v22 }
 0x140   : > { %v527_v37 = vadd.f32 %v526_v17, %v471_v32 }
 0x142   : > { %v650_v38 = vpop.f32.mrf.mxu1 }
 0x143   : > { %v293_v24 = vpop.f32.mrf.mxu0  ;;  %v475_v25 = vpop.f32.mrf.mxu2 }
 0x144   : > { %v407_v39 = vadd.f32 %v406_v20, %v293_v24 }
 0x145   : > { %v532_v28 = vpop.f32.mrf.mxu3 }
 0x146   : > { %v476_v47 = vadd.f32 %v475_v25, %v407_v39 }
 0x148   : > { %v533_v55 = vadd.f32 %v532_v28, %v476_v47 }
 0x14a   : > { %v654_v12 = vpop.f32.mrf.mxu1 }
 0x14b   : > { %v601_v40 = vpop.f32.mrf.mxu0  ;;  %v609_v41 = vpop.f32.mrf.mxu2 }
 0x14c   : > { %v602_v42 = vadd.f32 %v601_v40, %v515_v33  ;;  %v610_v43 = vadd.f32 %v609_v41, %v527_v37 }
 0x14d   : > { %v658_v45 = vpop.f32.mrf.mxu3 }
 0x14e   : > { %v651_v50 = vadd.f32 %v650_v38, %v602_v42  ;;  %v659_v53 = vadd.f32 %v658_v45, %v610_v43 }
 0x150   : > { %665 = vst [vmem:[%s178_s8] sm:$0xff] %v651_v50 }
 0x151   : > { %667 = vst [vmem:[%s178_s8 + $0x10] sm:$0xff] %v659_v53 }
 0x153   : > { %v605_v5 = vpop.f32.mrf.mxu0  ;;  %v613_v6 = vpop.f32.mrf.mxu2 }
 0x154   : > { %v606_v10 = vadd.f32 %v605_v5, %v521_v54  ;;  %v614_v11 = vadd.f32 %v613_v6, %v533_v55 }
 0x155   : > { %v662_v18 = vpop.f32.mrf.mxu3 }
 0x156   : > { %v655_v19 = vadd.f32 %v654_v12, %v606_v10  ;;  %v663_v23 = vadd.f32 %v662_v18, %v614_v11 }
 0x158   : > { %666 = vst [vmem:[%s178_s8 + $0x8] sm:$0xff] %v655_v19 }
 0x159   : > { %668 = vst [vmem:[%s178_s8 + $0x18] sm:$0xff] %v663_v23 }
 0x15a   : > { %945 = shalt.err (!%p942_p8)
}
 0x15b   : > { %s992_s26 = smov 128   ;;  %s993_s4 = smov 256  }
 0x15c   : > { %s994_s5 = smov 8  }
 0x15d   : > { %833 = dma.vmem_to_hbm [thread:$0]  (%p1060_p11), %s682_s19, 512, %s684_s23, %s670_s13, %s992_s26, %s993_s4, %s994_s5  }
 0x15e PF: > { %s698_s6 = sand.u32 1, %s972_s9   ;;  %p840_p10 = pnand %p771_p9, %p1064_p12 }
 0x15f   : > { %s699_s20 = scalar_lea.sflag [#allocation4], %s698_s6 }
 0x160   : > { %p841_p1 = pneg %p840_p10 }
 0x162   : > { %967 = dma.done.wait (%p841_p1), %s699_s20, 512  }
 0x163   : > { %969 = vsyncadd (%p841_p1), %s699_s20, 4294966784  ;;  %p15_p2 = scmp.ge.s32.totalorder %s1035_s15, 4   ;;  %s1374_s9 = smov %s976_s10 }
 0x164   : > { %s1375_s10 = smov %s980_s11  ;;  %s1376_s11 = smov %s1047_s18 }
 0x165   : > { %s1377_s12 = smov %s1035_s15  ;;  %17 = sbr.rel (!%p15_p2) target bundleno = 5 (0x5), region = 76 }
 0x16a   :  { %705 = vsyncpa [#allocation3], 1 }
 0x16b   :  { %707 = vsyncpa [#allocation3 + $0x1], 1 }
 0x16c   :  { %708 = vsyncpa [#allocation4], 1 }
 0x16d   :  { %710 = vsyncpa [#allocation4 + $0x1], 1 }

</bundles_post_ra>
